<compile_context>
chip_gen: v6e
topology: v6e:2x2x1
jax: 0.10.0
libtpu: 0.0.40
codegen_flags: <defaults>
</compile_context>

<pallas_src>
import numpy as np
import jax
import jax.numpy as jnp
from jax.experimental import pallas as pl
from jax.experimental.pallas import tpu as pltpu

LANE = 128  # lane width of a vreg; weight/bias slabs and output are padded to this


# ----------------------------------------------------------------------------
# Pallas kernel
# ----------------------------------------------------------------------------
def _full_spec(shape):
    # whole-array block, single grid step (exempt from the (8,128) tiling rule)
    return pl.BlockSpec(shape, lambda i: tuple(0 for _ in shape))


def _make_kernel(indim, outdim, m_pad):
    D = outdim
    # static row offsets into the packed bf16 weight slab
    r1 = indim           # end of w_in
    r2 = r1 + D          # end of w1t  (class half of mlp layer 1)
    r3 = r2 + D          # end of w1b  (x half of mlp layer 1)
    r4 = r3 + 2 * D      # end of w2
    r5 = r4 + D          # end of w3 (lane-padded)

    def kernel(x_ref, s_ref, w_ref, b_ref, o_ref):
        f32 = jnp.float32
        bf16 = jnp.bfloat16
        w = w_ref[...]            # [R, 128] bf16 (pre-cast host-side)
        b = b_ref[...]            # [4, 128] f32

        def wdot(a, ws):
            # weight matmuls: bf16 operands, f32 accumulation (MXU native)
            return jnp.dot(a.astype(bf16), ws, preferred_element_type=f32)

        # in_proj: x @ w_in + b_in                                   [N, D]
        x_proj = wdot(x_ref[...], w[:r1, :D]) + b[0:1, :D]

        # single structural matmul:
        #   rows [:m_pad]  = A  (mask * pool / count folded with repeat_interleave)
        #   rows [m_pad:]  = sel (true-node one-hot row gather)
        sx = jnp.dot(s_ref[...], x_proj, preferred_element_type=f32)  # [2*m_pad, D]
        rep_class = sx[:m_pad]                                         # [m_pad, D]
        x_true = sx[m_pad:]                                            # [m_pad, D]

        # 3-layer MLP; the concat is folded into split layer-1 weight halves
        h = wdot(rep_class, w[r1:r2, :2 * D]) + wdot(x_true, w[r2:r3, :2 * D]) \
            + b[1:2, :2 * D]
        h = jnp.maximum(h, 0.0)                                        # [m_pad, 2D]
        h = jnp.maximum(wdot(h, w[r3:r4, :D]) + b[2:3, :D], 0.0)       # [m_pad, D]
        out = wdot(h, w[r4:r5, :]) + b[3:4, :]                         # [m_pad, 128]
        o_ref[...] = out.astype(o_ref.dtype)                           # full (8,128) vst

    return kernel


def ofamlp_forward(packed, task_dim, num_out_rows):
    """Single fused pallas_call for the whole OFAMLP forward (4 inputs)."""
    x, S, w_slab, b_slab = packed["x"], packed["S"], packed["w"], packed["b"]
    indim = x.shape[1]
    outdim = packed["outdim"]
    m_pad = S.shape[0] // 2
    kernel = _make_kernel(indim, outdim, m_pad)
    inputs = (x, S, w_slab, b_slab)
    out = pl.pallas_call(
        kernel,
        out_shape=jax.ShapeDtypeStruct((m_pad, LANE), jnp.float32),
        grid=(1,),
        in_specs=[_full_spec(a.shape) for a in inputs],
        out_specs=_full_spec((m_pad, LANE)),
        compiler_params=pltpu.CompilerParams(
            dimension_semantics=("arbitrary",)),
    )(*inputs)
    # slice padded rows / lanes back down
    return out[:num_out_rows, :task_dim]


# ----------------------------------------------------------------------------
# Parameters & host-side prep
# ----------------------------------------------------------------------------
def init_params(key, indim, outdim, task_dim):
    def lin(k, fan_in, fan_out):
        kw, kb = jax.random.split(k)
        w = jax.random.normal(kw, (fan_in, fan_out), jnp.float32) / np.sqrt(fan_in)
        b = 0.01 * jax.random.normal(kb, (1, fan_out), jnp.float32)
        return w, b

    ks = jax.random.split(key, 4)
    return {
        "in_proj": lin(ks[0], indim, outdim),
        "mlp1":    lin(ks[1], 2 * outdim, 2 * outdim),
        "mlp2":    lin(ks[2], 2 * outdim, outdim),
        "mlp3":    lin(ks[3], outdim, task_dim),
    }


def prepare_inputs(params, x, target_mask, batch, true_idx,
                   num_graphs, num_classes, task_dim):
    """One-time host-side prep: fold the structural chain into S, pack slabs."""
    indim = x.shape[1]
    outdim = params["in_proj"][0].shape[1]
    N = x.shape[0]
    M = num_graphs * num_classes
    m_pad = max(8, ((M + 7) // 8) * 8)
    assert 2 * outdim <= LANE, "weight slab packing assumes 2*outdim <= 128"

    # --- structural matrix S = [A ; sel] (f32: A holds 1/count-scaled entries) ---
    mask = np.asarray(target_mask, np.float32).reshape(-1)                 # [N]
    pool = (np.asarray(batch)[None, :] ==
            np.arange(num_graphs)[:, None]).astype(np.float32)             # [G, N]
    count = (pool * mask[None, :]).sum(axis=1)                             # [G]
    a_pool = pool * mask[None, :] / np.maximum(count, 1.0)[:, None]        # [G, N]
    A = a_pool[np.repeat(np.arange(num_graphs), num_classes)]              # [M, N]
    sel = np.zeros((M, N), np.float32)
    sel[np.arange(M), np.asarray(true_idx)] = 1.0
    S = np.zeros((2 * m_pad, N), np.float32)
    S[:M] = A
    S[m_pad:m_pad + M] = sel

    # --- bf16 weight slab (lane-padded to 128), f32 bias slab [4, 128] ---
    w_in, b_in = params["in_proj"]
    w1, b1 = params["mlp1"]
    w2, b2 = params["mlp2"]
    w3, b3 = params["mlp3"]
    w1t, w1b = np.asarray(w1)[:outdim], np.asarray(w1)[outdim:]

    rows = indim + 5 * outdim
    rows_pad = ((rows + 7) // 8) * 8
    w_slab = np.zeros((rows_pad, LANE), np.float32)
    r = 0
    w_slab[r:r + indim, :outdim] = np.asarray(w_in);          r += indim
    w_slab[r:r + outdim, :2 * outdim] = w1t;                  r += outdim
    w_slab[r:r + outdim, :2 * outdim] = w1b;                  r += outdim
    w_slab[r:r + 2 * outdim, :outdim] = np.asarray(w2);       r += 2 * outdim
    w_slab[r:r + outdim, :task_dim] = np.asarray(w3);         r += outdim

    b_slab = np.zeros((4, LANE), np.float32)
    b_slab[0, :outdim] = np.asarray(b_in).reshape(-1)
    b_slab[1, :2 * outdim] = np.asarray(b1).reshape(-1)
    b_slab[2, :outdim] = np.asarray(b2).reshape(-1)
    b_slab[3, :task_dim] = np.asarray(b3).reshape(-1)

    return {
        "x": jnp.asarray(x, jnp.float32),
        "S": jnp.asarray(S, jnp.float32),
        "w": jnp.asarray(w_slab, jnp.bfloat16),
        "b": jnp.asarray(b_slab, jnp.float32),
        "outdim": outdim,
    }


# ----------------------------------------------------------------------------
# References
# ----------------------------------------------------------------------------
def ref_forward_mixed(packed, indim, task_dim, num_out_rows):
    """Pure-JAX mirror of the kernel math (bf16 weight slab, f32 accumulation)."""
    D = packed["outdim"]
    x, S, w, b = packed["x"], packed["S"], packed["w"], packed["b"]
    m_pad = S.shape[0] // 2
    r1, r2, r3, r4, r5 = indim, indim + D, indim + 2 * D, indim + 4 * D, indim + 5 * D
    bf16, f32 = jnp.bfloat16, jnp.float32

    def wdot(a, ws):
        return jnp.dot(a.astype(bf16), ws, preferred_element_type=f32)

    x_proj = wdot(x, w[:r1, :D]) + b[0:1, :D]
    sx = jnp.dot(S, x_proj, preferred_element_type=f32)
    rep_class, x_true = sx[:m_pad], sx[m_pad:]
    h = jnp.maximum(wdot(rep_class, w[r1:r2, :2 * D])
                    + wdot(x_true, w[r2:r3, :2 * D]) + b[1:2, :2 * D], 0.0)
    h = jnp.maximum(wdot(h, w[r3:r4, :D]) + b[2:3, :D], 0.0)
    out = wdot(h, w[r4:r5, :]) + b[3:4, :]
    return out[:num_out_rows, :task_dim]


def ref_forward_f32(params, x, target_mask, batch, true_idx, num_graphs, num_classes):
    """Faithful f32 reference of the original torch module's forward."""
    w_in, b_in = params["in_proj"]
    x_proj = x @ w_in + b_in
    mask = jnp.asarray(target_mask, jnp.float32).reshape(-1, 1)
    pool = jnp.asarray((np.asarray(batch)[None, :] ==
                        np.arange(num_graphs)[:, None]).astype(np.float32))
    masked = mask * x_proj
    class_emb = (pool @ masked) / (pool @ mask)
    rep_class = jnp.repeat(class_emb, num_classes, axis=0)
    x_true = x_proj[jnp.asarray(true_idx)]
    h = jnp.concatenate([rep_class, x_true], axis=-1)
    w1, b1 = params["mlp1"]
    w2, b2 = params["mlp2"]
    w3, b3 = params["mlp3"]
    h = jnp.maximum(h @ w1 + b1, 0.0)
    h = jnp.maximum(h @ w2 + b2, 0.0)
    return h @ w3 + b3


# ----------------------------------------------------------------------------
# Main
# ----------------------------------------------------------------------------
if __name__ == "__main__":
    indim, outdim, task_dim = 16, 32, 6
    num_graphs, nodes_per_graph, num_classes = 2, 12, 3
    N = num_graphs * nodes_per_graph           # 24 nodes
    M = num_graphs * num_classes               # 6 output rows

    # batch vector
    batch = np.repeat(np.arange(num_graphs), nodes_per_graph)

    # target_node_mask: first half of each graph's nodes
    target_mask = np.zeros((N,), dtype=np.float32)
    for g in range(num_graphs):
        target_mask[g * nodes_per_graph: g * nodes_per_graph + nodes_per_graph // 2] = 1.0

    # true_nodes_mask selects num_classes nodes per graph (ascending node order,
    # matching boolean-mask semantics)
    true_idx = np.concatenate(
        [g * nodes_per_graph + np.arange(num_classes) for g in range(num_graphs)]
    ).astype(np.int32)

    # features & parameters (edge_attr / its projection are dead w.r.t. the
    # returned result in the torch module and are dropped)
    key = jax.random.PRNGKey(0)
    k_x, k_p = jax.random.split(key)
    x = jax.random.normal(k_x, (N, indim), jnp.float32)
    params = init_params(k_p, indim, outdim, task_dim)

    packed = prepare_inputs(params, x, target_mask, batch, true_idx,
                            num_graphs, num_classes, task_dim)

    res = ofamlp_forward(packed, task_dim, M)
    res = jax.block_until_ready(res)
    assert res.shape == (M, task_dim)

    # 1) implementation check vs a JAX mirror of the kernel's mixed precision
    ref_m = ref_forward_mixed(packed, indim, task_dim, M)
    np.testing.assert_allclose(np.asarray(res), np.asarray(ref_m),
                               rtol=5e-3, atol=5e-3)

    # 2) semantics check vs the faithful f32 torch-module reference
    ref_f = ref_forward_f32(params, x, target_mask, batch, true_idx,
                            num_graphs, num_classes)
    np.testing.assert_allclose(np.asarray(res), np.asarray(ref_f),
                               rtol=1e-1, atol=1e-1)

    print("KERNEL_OK")
</pallas_src>

<mosaic_0001>
module attributes {stable_mosaic.version = 11 : i64} {
  func.func @kernel(%arg0: i32, %arg1: memref<24x16xf32, #tpu.memory_space<vmem>>, %arg2: memref<16x24xf32, #tpu.memory_space<vmem>>, %arg3: memref<176x128xbf16, #tpu.memory_space<vmem>>, %arg4: memref<4x128xf32, #tpu.memory_space<vmem>>, %arg5: memref<8x128xf32, #tpu.memory_space<vmem>>) attributes {dimension_semantics = [#tpu.dimension_semantics<arbitrary>], iteration_bounds = array<i64: 1>, scalar_prefetch = 0 : i64, scratch_operands = 0 : i64, tpu.core_type = #tpu.core_type<tc>, window_params = [{pipeline_mode = #tpu.pipeline_mode<synchronous>, transform_indices = @transform_0, window_bounds = array<i64: 24, 16>}, {pipeline_mode = #tpu.pipeline_mode<synchronous>, transform_indices = @transform_1, window_bounds = array<i64: 16, 24>}, {pipeline_mode = #tpu.pipeline_mode<synchronous>, transform_indices = @transform_2, window_bounds = array<i64: 176, 128>}, {pipeline_mode = #tpu.pipeline_mode<synchronous>, transform_indices = @transform_3, window_bounds = array<i64: 4, 128>}, {pipeline_mode = #tpu.pipeline_mode<synchronous>, transform_indices = @transform_4, window_bounds = array<i64: 8, 128>}]} {
    %c0 = arith.constant 0 : index
    %c0_0 = arith.constant 0 : index
    %0 = vector.load %arg3[%c0, %c0_0] : memref<176x128xbf16, #tpu.memory_space<vmem>>, vector<176x128xbf16>
    %c0_1 = arith.constant 0 : index
    %c0_2 = arith.constant 0 : index
    %1 = vector.load %arg4[%c0_1, %c0_2] : memref<4x128xf32, #tpu.memory_space<vmem>>, vector<4x128xf32>
    %c0_3 = arith.constant 0 : index
    %c0_4 = arith.constant 0 : index
    %2 = vector.load %arg1[%c0_3, %c0_4] : memref<24x16xf32, #tpu.memory_space<vmem>>, vector<24x16xf32>
    %3 = vector.extract_strided_slice %0 {offsets = [0, 0], sizes = [16, 32], strides = [1, 1]} : vector<176x128xbf16> to vector<16x32xbf16>
    %4 = arith.truncf %2 : vector<24x16xf32> to vector<24x16xbf16>
    %cst = arith.constant dense<0.000000e+00> : vector<24x32xf32>
    %5 = tpu.matmul %4, %3, %cst {dimension_numbers = #tpu.dot_dimension_numbers<[1], [0], [0], [1], [0, 0, 1, 1], [], []>} : vector<24x16xbf16>, vector<16x32xbf16>, vector<24x32xf32> -> vector<24x32xf32>
    %6 = vector.extract_strided_slice %1 {offsets = [0, 0], sizes = [1, 32], strides = [1, 1]} : vector<4x128xf32> to vector<1x32xf32>
    %7 = vector.broadcast %6 : vector<1x32xf32> to vector<24x32xf32>
    %8 = arith.addf %5, %7 : vector<24x32xf32>
    %c0_5 = arith.constant 0 : index
    %c0_6 = arith.constant 0 : index
    %9 = vector.load %arg2[%c0_5, %c0_6] : memref<16x24xf32, #tpu.memory_space<vmem>>, vector<16x24xf32>
    %cst_7 = arith.constant dense<0.000000e+00> : vector<16x32xf32>
    %10 = tpu.matmul %9, %8, %cst_7 {dimension_numbers = #tpu.dot_dimension_numbers<[1], [0], [0], [1], [0, 0, 1, 1], [], []>} : vector<16x24xf32>, vector<24x32xf32>, vector<16x32xf32> -> vector<16x32xf32>
    %11 = vector.extract_strided_slice %10 {offsets = [0, 0], sizes = [8, 32], strides = [1, 1]} : vector<16x32xf32> to vector<8x32xf32>
    %12 = vector.extract_strided_slice %10 {offsets = [8, 0], sizes = [8, 32], strides = [1, 1]} : vector<16x32xf32> to vector<8x32xf32>
    %13 = vector.extract_strided_slice %0 {offsets = [16, 0], sizes = [32, 64], strides = [1, 1]} : vector<176x128xbf16> to vector<32x64xbf16>
    %14 = arith.truncf %11 : vector<8x32xf32> to vector<8x32xbf16>
    %cst_8 = arith.constant dense<0.000000e+00> : vector<8x64xf32>
    %15 = tpu.matmul %14, %13, %cst_8 {dimension_numbers = #tpu.dot_dimension_numbers<[1], [0], [0], [1], [0, 0, 1, 1], [], []>} : vector<8x32xbf16>, vector<32x64xbf16>, vector<8x64xf32> -> vector<8x64xf32>
    %16 = vector.extract_strided_slice %0 {offsets = [48, 0], sizes = [32, 64], strides = [1, 1]} : vector<176x128xbf16> to vector<32x64xbf16>
    %17 = arith.truncf %12 : vector<8x32xf32> to vector<8x32xbf16>
    %cst_9 = arith.constant dense<0.000000e+00> : vector<8x64xf32>
    %18 = tpu.matmul %17, %16, %cst_9 {dimension_numbers = #tpu.dot_dimension_numbers<[1], [0], [0], [1], [0, 0, 1, 1], [], []>} : vector<8x32xbf16>, vector<32x64xbf16>, vector<8x64xf32> -> vector<8x64xf32>
    %19 = arith.addf %15, %18 : vector<8x64xf32>
    %20 = vector.extract_strided_slice %1 {offsets = [1, 0], sizes = [1, 64], strides = [1, 1]} : vector<4x128xf32> to vector<1x64xf32>
    %21 = vector.broadcast %20 : vector<1x64xf32> to vector<8x64xf32>
    %22 = arith.addf %19, %21 : vector<8x64xf32>
    %cst_10 = arith.constant 0.000000e+00 : f32
    %23 = vector.broadcast %cst_10 : f32 to vector<8x64xf32>
    %24 = arith.maximumf %22, %23 : vector<8x64xf32>
    %25 = vector.extract_strided_slice %0 {offsets = [80, 0], sizes = [64, 32], strides = [1, 1]} : vector<176x128xbf16> to vector<64x32xbf16>
    %26 = arith.truncf %24 : vector<8x64xf32> to vector<8x64xbf16>
    %cst_11 = arith.constant dense<0.000000e+00> : vector<8x32xf32>
    %27 = tpu.matmul %26, %25, %cst_11 {dimension_numbers = #tpu.dot_dimension_numbers<[1], [0], [0], [1], [0, 0, 1, 1], [], []>} : vector<8x64xbf16>, vector<64x32xbf16>, vector<8x32xf32> -> vector<8x32xf32>
    %28 = vector.extract_strided_slice %1 {offsets = [2, 0], sizes = [1, 32], strides = [1, 1]} : vector<4x128xf32> to vector<1x32xf32>
    %29 = vector.broadcast %28 : vector<1x32xf32> to vector<8x32xf32>
    %30 = arith.addf %27, %29 : vector<8x32xf32>
    %cst_12 = arith.constant 0.000000e+00 : f32
    %31 = vector.broadcast %cst_12 : f32 to vector<8x32xf32>
    %32 = arith.maximumf %30, %31 : vector<8x32xf32>
    %33 = vector.extract_strided_slice %0 {offsets = [144, 0], sizes = [32, 128], strides = [1, 1]} : vector<176x128xbf16> to vector<32x128xbf16>
    %34 = arith.truncf %32 : vector<8x32xf32> to vector<8x32xbf16>
    %cst_13 = arith.constant dense<0.000000e+00> : vector<8x128xf32>
    %35 = tpu.matmul %34, %33, %cst_13 {dimension_numbers = #tpu.dot_dimension_numbers<[1], [0], [0], [1], [0, 0, 1, 1], [], []>} : vector<8x32xbf16>, vector<32x128xbf16>, vector<8x128xf32> -> vector<8x128xf32>
    %36 = vector.extract_strided_slice %1 {offsets = [3, 0], sizes = [1, 128], strides = [1, 1]} : vector<4x128xf32> to vector<1x128xf32>
    %37 = vector.broadcast %36 : vector<1x128xf32> to vector<8x128xf32>
    %38 = arith.addf %35, %37 : vector<8x128xf32>
    %c0_14 = arith.constant 0 : index
    %c0_15 = arith.constant 0 : index
    %39 = vector.load %arg5[%c0_14, %c0_15] : memref<8x128xf32, #tpu.memory_space<vmem>>, vector<8x128xf32>
    tpu.vector_store %arg5[%c0_14, %c0_15], %38 {strides = array<i32>} : memref<8x128xf32, #tpu.memory_space<vmem>>, vector<8x128xf32>,
    return
  }
  func.func @transform_0(%arg0: i32) -> (i32, i32) {
    %c0_i32 = arith.constant 0 : i32
    %c0_i32_0 = arith.constant 0 : i32
    %c0_i32_1 = arith.constant 0 : i32
    return %c0_i32, %c0_i32_0 : i32, i32
  }
  func.func @transform_1(%arg0: i32) -> (i32, i32) {
    %c0_i32 = arith.constant 0 : i32
    %c0_i32_0 = arith.constant 0 : i32
    %c0_i32_1 = arith.constant 0 : i32
    return %c0_i32, %c0_i32_0 : i32, i32
  }
  func.func @transform_2(%arg0: i32) -> (i32, i32) {
    %c0_i32 = arith.constant 0 : i32
    %c0_i32_0 = arith.constant 0 : i32
    %c0_i32_1 = arith.constant 0 : i32
    return %c0_i32, %c0_i32_0 : i32, i32
  }
  func.func @transform_3(%arg0: i32) -> (i32, i32) {
    %c0_i32 = arith.constant 0 : i32
    %c0_i32_0 = arith.constant 0 : i32
    %c0_i32_1 = arith.constant 0 : i32
    return %c0_i32, %c0_i32_0 : i32, i32
  }
  func.func @transform_4(%arg0: i32) -> (i32, i32) {
    %c0_i32 = arith.constant 0 : i32
    %c0_i32_0 = arith.constant 0 : i32
    %c0_i32_1 = arith.constant 0 : i32
    return %c0_i32, %c0_i32_0 : i32, i32
  }
}

</mosaic_0001>

<bundles_post_ra>
// kernel: tpu_custom_call.1
= control target key start
LH: loop header
LB: loop body
LE: loop exit
PB: predicated region body
PF: predicated region fallthrough
CT: control target
= control target key end

     0   :  { %9 = vsyncpa [#allocation3], 0  ;;  %s708_s0 = inlined_call_operand.vmem [shape: f32[24,16], index: 0, kind: input, shape index: {}]   ;;  %s709_s1 = inlined_call_operand.vmem [shape: f32[16,24], index: 1, kind: input, shape index: {}]   ;;  %s710_s2 = inlined_call_operand.hbm [shape: bf16[176,128], index: 2, kind: input, shape index: {}]   ;;  %s711_s3 = inlined_call_operand.vmem [shape: f32[4,128], index: 3, kind: input, shape index: {}]   ;;  %s712_s4 = inlined_call_operand.hbm [shape: f32[8,128], index: 4, kind: output, shape index: {}]  }
   0x1   :  { %10 = vsyncpa [#allocation4], 0  ;;  %s632_s15 = smov [#allocation2]  }
   0x2   :  { %s20_s16 = sshll.u32 %s632_s15, 4  ;;  %s21_s16 = int_to_ptr.vmem [resolvable:$true] %s20_s16 }
   0x3   :  { %s596_s17 = scalar_lea.vmem %s21_s16, 1408  ;;  %p601_p1 = scmp.lt.s32.totalorder %s21_s16, %s21_s16 }
   0x4   :  { %p597_p0 = scmp.ne.s32.totalorder %s21_s16, %s596_s17  ;;  %p602_p2 = scmp.lt.s32.totalorder %s596_s17, %s596_s17 }
   0x6   :  { %p603_p3 = por %p602_p2, %p601_p1 }
   0x8   :  { %p604_p4 = pnand %p603_p3, %p597_p0 }
   0xa   :  { %607 = shalt.err (!%p604_p4)
}
   0xb   :  { %s633_s18 = smov 64   ;;  %s634_s19 = smov 4  }
   0xc   :  { %26 = dma.hbm_to_vmem [thread:$0]  %s710_s2, 1408, %s21_s16, [#allocation3], %s633_s18, %s633_s18, %s634_s19  }
   0xd   :  { %628 = dma.done.wait [#allocation3], 1408  }
   0xe   :  { %629 = vsyncadd [#allocation3], 4294965888  ;;  %v577_v0 = vld [vmem:[#allocation2] sm:$0xff]   ;;  %v57_v2 = vld [vmem:[%s708_s0 + $0x8] sm:$0xff]  ;;  %vm71_vm0 = vcmask 130048   ;;  %vm128_vm1 = vcmask 195584   ;;  %v61_v9 = vlaneseq }
   0xf   :  { %v56_v1 = vld [vmem:[%s708_s0] sm:$0xff]  ;;  %v58_v3 = vld [vmem:[%s708_s0 + $0x10] sm:$0xff]  ;;  %520 = vmatprep.subr.bf16.mxu0 %v577_v0  ;;  %v635_v8 = vmov 0.0   ;;  %v127_v21 = vld [vmem:[%s709_s1 + $0x8] sm:$0xff]  ;;  %vm636_vm2 = vmmov 0   ;;  %vm224_vm3 = vcmask 261120  }
  0x10   :  { %v59_v4 = vpack.c.bf16 %v57_v2, %v56_v1  ;;  %v60_v5 = vpack.c.bf16 %v58_v3, %v58_v3  ;;  %521 = vmatpush3.bf16.msra.mxu0 %v577_v0  ;;  %v126_v6 = vld [vmem:[%s709_s1] sm:$0xff]  ;;  %v679_v10 = vshrl.u32 %v61_v9, 7  ;;  %v579_v22 = vld [vmem:[#allocation2 + $0x10] sm:$0xff]   ;;  %v580_v23 = vld [vmem:[#allocation2 + $0x18] sm:$0xff]   ;;  %vm358_vm4 = vcmask 523264   ;;  %s637_s1 = smov [#allocation5]  }
  0x11   :  { %532 = vmatprep.mubr.msk.f32.mxu1 %vm128_vm1, %v126_v6  ;;  %v578_v7 = vld [vmem:[#allocation2 + $0x20] sm:$0xff]   ;;  %535 = vmatprep.subr.bf16.mxu0 %v635_v8  ;;  %v581_v24 = vld [vmem:[#allocation2 + $0x8] sm:$0xff]   ;;  %v583_v30 = vld [vmem:[#allocation2 + $0x38] sm:$0xff]  }
  0x12   :  { %522 = vmatprep.mubr.msk.bf16.mxu0 %vm71_vm0, %v59_v4  ;;  %v63_v11 = vsub.s32 0, %v679_v10  ;;  %v685_v12 = vld [vmem:[%s711_s3] sm:$0xf]  ;;  %v584_v31 = vld [vmem:[#allocation2 + $0x30] sm:$0xff]   ;;  %v585_v32 = vld [vmem:[#allocation2 + $0x28] sm:$0xff]   ;;  %v325_v34 = vsub.s32 1, %v679_v10 }
  0x13   :  { %523 = vmatmul.mubr.msk.bf16.vlgmr.msra.gmra.mxu0 %vm71_vm0, %v60_v5  ;;  %v582_v26 = vld [vmem:[#allocation2 + $0x40] sm:$0xff]   ;;  %v586_v33 = vld [vmem:[#allocation2 + $0x50] sm:$0xff]   ;;  %v587_v48 = vld [vmem:[#allocation2 + $0x48] sm:$0xff]   ;;  %v332_v49 = vsub.s32 2, %v679_v10  ;;  %v406_v58 = vsub.s32 3, %v679_v10  ;;  %s470_s3 = sshll.u32 %s637_s1, 4  ;;  %s471_s3 = int_to_ptr.vmem [resolvable:$true] %s470_s3 }
  0x14   :  { %536 = vmatpush3.bf16.msra.mxu0 %v578_v7  ;;  %v64_v13 = vrot.slane %v685_v12, %v63_v11  ;;  %539 = vmatprep.mubr.msk.bf16.mxu0 %vm636_vm2, %v635_v8  ;;  %v326_v36 = vrot.slane %v685_v12, %v325_v34  ;;  %s608_s6 = scalar_lea.vmem %s471_s3, 128  ;;  %p613_p6 = scmp.lt.s32.totalorder %s471_s3, %s471_s3 }
  0x15   :  { %537 = vmatprep.subr.bf16.mxu0 %v635_v8  ;;  %v333_v50 = vrot.slane %v685_v12, %v332_v49  ;;  %v407_v59 = vrot.slane %v685_v12, %v406_v58  ;;  %p609_p5 = scmp.ne.s32.totalorder %s471_s3, %s608_s6  ;;  %p614_p7 = scmp.lt.s32.totalorder %s608_s6, %s608_s6 }
  0x17   :  { %p615_p8 = por %p614_p7, %p613_p6 }
  0x18   :  { %538 = vmatpush3.bf16.msra.mxu0 %v580_v23 }
  0x19   :  { %551 = vmatprep.subr.bf16.mxu0 %v635_v8  ;;  %p616_p9 = pnand %p615_p8, %p609_p5 }
  0xd3   :  { %v524_v14 = vpop.f32.mrf.mxu0 }
  0xd4   :  { %v121_v15 = vadd.f32 %v524_v14, %v64_v13 }
  0xd5   :  { %v112_v16 = vpop.f32.mrf.mxu0 }
  0xd6   :  { %526 = vmatprep.subr.mxu1 %v121_v15  ;;  %v113_v20 = vadd.f32 %v112_v16, %v64_v13 }
  0xd7   :  { %v525_v17 = vpop.f32.mrf.mxu0  ;;  %527 = vmatpush3.msra.mxu1 %v121_v15 }
  0xd9   :  { %v115_v18 = vpop.f32.mrf.mxu0 }
  0xda   :  { %v116_v19 = vadd.f32 %v115_v18, %v64_v13 }
  0xdc   :  { %528 = vmatprep.subr.mxu1 %v116_v19 }
  0xdd   :  { %529 = vmatpush3.msra.mxu1 %v116_v19 }
  0xde   :  { %530 = vmatprep.subr.mxu1 %v113_v20 }
  0xdf   :  { %531 = vmatpush3.msra.mxu1 %v113_v20 }
  0xe0   :  { %533 = vmatmul.mubr.msk.f32.vlgmr.msra.gmra.mxu1 %vm128_vm1, %v127_v21  ;;  %543 = vmatprep.subr.bf16.mxu1 %v635_v8 }
  0xe1   :  { %544 = vmatpush3.bf16.msra.mxu1 %v579_v22  ;;  %547 = vmatprep.mubr.msk.bf16.mxu1 %vm636_vm2, %v635_v8 }
  0xe2   :  { %545 = vmatprep.subr.bf16.mxu1 %v635_v8 }
  0xe5   :  { %546 = vmatpush3.bf16.msra.mxu1 %v581_v24 }
  0xe6   :  { %563 = vmatprep.subr.bf16.mxu1 %v635_v8 }
 0x1a0   :  { %v534_v25 = vpop.f32.mrf.mxu1 }
 0x1a1   :  { %v211_v27 = vpack.c.bf16 %v534_v25, %v534_v25 }
 0x1a2   :  { %v201_v28 = vpop.f32.mrf.mxu1 }
 0x1a3   :  { %v210_v29 = vpack.c.bf16 %v201_v28, %v201_v28  ;;  %540 = vmatmul.mubr.msk.bf16.vlgmr.msra.gmra.mxu0 %vm224_vm3, %v211_v27 }
 0x1a4   :  { %552 = vmatpush3.bf16.msra.mxu0 %v582_v26  ;;  %559 = vmatprep.mubr.msk.bf16.mxu0 %vm636_vm2, %v635_v8 }
 0x1a5   :  { %548 = vmatmul.mubr.msk.bf16.vlgmr.msra.gmra.mxu1 %vm224_vm3, %v210_v29  ;;  %553 = vmatprep.subr.bf16.mxu0 %v635_v8 }
 0x1a6   :  { %567 = vmatprep.mubr.msk.bf16.mxu1 %vm636_vm2, %v635_v8  ;;  %564 = vmatpush3.bf16.msra.mxu1 %v586_v33 }
 0x1a7   :  { %565 = vmatprep.subr.bf16.mxu1 %v635_v8 }
 0x1a8   :  { %554 = vmatpush3.bf16.msra.mxu0 %v583_v30 }
 0x1a9   :  { %555 = vmatprep.subr.bf16.mxu0 %v635_v8 }
 0x1aa   :  { %566 = vmatpush3.bf16.msra.mxu1 %v587_v48 }
 0x1ac   :  { %556 = vmatpush3.bf16.msra.mxu0 %v584_v31 }
 0x1ad   :  { %557 = vmatprep.subr.bf16.mxu0 %v635_v8 }
 0x1b0   :  { %558 = vmatpush3.bf16.msra.mxu0 %v585_v32 }
 0x263   :  { %v262_v35 = vpop.f32.mrf.mxu0 }
 0x265   :  { %v541_v37 = vpop.f32.mrf.mxu0  ;;  %v317_v38 = vpop.f32.mrf.mxu1 }
 0x266   :  { %v318_v39 = vadd.f32 %v317_v38, %v262_v35 }
 0x267   :  { %v265_v40 = vpop.f32.mrf.mxu0  ;;  %v549_v41 = vpop.f32.mrf.mxu1 }
 0x268   :  { %v327_v42 = vadd.f32 %v326_v36, %v318_v39 }
 0x269   :  { %v542_v43 = vpop.f32.mrf.mxu0  ;;  %v320_v44 = vpop.f32.mrf.mxu1 }
 0x26a   :  { %v328_v45 = vmax.f32 %v327_v42, 0.0 }
 0x26b   :  { %v550_v46 = vpop.f32.mrf.mxu1 }
 0x26c   :  { %v329_v47 = vpack.c.bf16 %v328_v45, %v328_v45 }
 0x26e   :  { %560 = vmatmul.mubr.msk.bf16.vlgmr.msra.gmra.mxu0 %vm358_vm4, %v329_v47 }
 0x32e   :  { %v396_v51 = vpop.f32.mrf.mxu0 }
 0x32f   :  { %v397_v52 = vadd.f32 %v396_v51, %v333_v50 }
 0x330   :  { %v561_v53 = vpop.f32.mrf.mxu0 }
 0x331   :  { %v402_v54 = vmax.f32 %v397_v52, 0.0 }
 0x332   :  { %v399_v55 = vpop.f32.mrf.mxu0 }
 0x333   :  { %v403_v56 = vpack.c.bf16 %v402_v54, %v402_v54 }
 0x334   :  { %v562_v57 = vpop.f32.mrf.mxu0 }
 0x335   :  { %568 = vmatmul.mubr.msk.bf16.vlgmr.msra.gmra.mxu1 %vm224_vm3, %v403_v56 }
 0x3f5   :  { %v457_v60 = vpop.f32.mrf.mxu1 }
 0x3f6   :  { %v458_v61 = vadd.f32 %v457_v60, %v407_v59 }
 0x3f7   :  { %v569_v62 = vpop.f32.mrf.mxu1 }
 0x3f8   :  { %463 = vst [vmem:[#allocation5] sm:$0xff] %v458_v61 }
 0x3f9   :  { %v460_v63 = vpop.f32.mrf.mxu1 }
 0x3fa   :  { %619 = shalt.err (!%p616_p9)
}
 0x3fb   :  { %473 = dma.vmem_to_hbm [thread:$0]  %s471_s3, 128, %s712_s4, [#allocation4]   ;;  %v570_v0 = vpop.f32.mrf.mxu1 }
 0x3fc   :  { %630 = dma.done.wait [#allocation4], 128  }
 0x3fd   :  { %631 = vsyncadd [#allocation4], 4294967168 }
 0x3fe   :  { %477 = vsyncpa [#allocation3], 1 }
 0x3ff   :  { %478 = vsyncpa [#allocation4], 1 }

</bundles_post_ra>
